<compile_context>
chip_gen: v6e
topology: v6e:2x2x1
jax: 0.10.0
libtpu: 0.0.40
codegen_flags: <defaults>
</compile_context>

<pallas_src>
import functools

import jax
import jax.numpy as jnp
from jax import lax
from jax.experimental import pallas as pl
from jax.experimental.pallas import tpu as pltpu

NEG_SLOPE = 0.01          # torch.nn.functional.leaky_relu default negative slope
LANE = 128
SUBLANE = 8
MASK_SUBLANE = 32         # int8 native sublane tile
NEG_BIG = 1e30            # softmax mask bias magnitude / running-max init


def _round_up(a, b):
    return (a + b - 1) // b * b


def _leaky(x):
    return jnp.where(x >= 0, x, NEG_SLOPE * x)


def _vmem_capacity():
    try:
        return int(pltpu.get_tpu_info().vmem_capacity_bytes)
    except Exception:
        return 64 << 20        # conservative (v7x per-TC) fallback


# ----------------------------- Pallas kernels ------------------------------ #

def mlp_kernel(feat_ref, w_ref, b_ref, out_ref):
    # [TI, F]_bf16 @ [F, Cp]_bf16 (f32 accumulate) + [1, Cp]_f32, then leaky_relu
    y = lax.dot_general(
        feat_ref[...], w_ref[...],
        dimension_numbers=(((1,), (0,)), ((), ())),
        preferred_element_type=jnp.float32)
    y = y + b_ref[...]
    out_ref[...] = _leaky(y)


def refine_kernel(xn_dst_ref, xn_src_ref, x_src_ref, mask_ref, out_ref, *rest,
                  has_act, want_stats):
    # xn_dst : [TM, Cp] bf16  L2-normalized destination-row tile (const over j)
    # xn_src : [TS, Cp] bf16  L2-normalized source-row tile
    # x_src  : [TS, Cp] bf16  raw source features (aggregation operand)
    # mask   : [TM, TS] int8  0/1 adjacency tile (row = destination)
    # scratch: running max [TM,1], running denom [TM,1], accumulator [TM,Cp]
    if want_stats:
        stats_ref = rest[0]
        m_sc, l_sc, acc_sc = rest[1], rest[2], rest[3]
    else:
        stats_ref = None
        m_sc, l_sc, acc_sc = rest

    j = pl.program_id(1)

    @pl.when(j == 0)
    def _():
        m_sc[...] = jnp.full_like(m_sc, -NEG_BIG)
        l_sc[...] = jnp.zeros_like(l_sc)
        acc_sc[...] = jnp.zeros_like(acc_sc)

    # cosine similarity dst-rows x src-rows (contraction over the feature dim
    # of both operands -> MXU-direct, no transpose copies)
    s = lax.dot_general(
        xn_dst_ref[...], xn_src_ref[...],
        dimension_numbers=(((1,), (1,)), ((), ())),
        preferred_element_type=jnp.float32)                       # [TM, TS]
    if has_act:
        s = _leaky(s)

    # masked online softmax (bias + multiply form; no compare/select pair)
    mask_f = mask_ref[...].astype(jnp.float32)                    # 0 / 1
    s = s + (mask_f - 1.0) * jnp.float32(NEG_BIG)                 # masked -> -1e30

    m_prev = m_sc[...]
    m_new = jnp.maximum(m_prev, jnp.max(s, axis=-1, keepdims=True))
    a = jnp.exp(m_prev - m_new)                                   # [TM, 1]
    p = jnp.exp(s - m_new) * mask_f                               # [TM, TS]
    l_sc[...] = a * l_sc[...] + jnp.sum(p, axis=-1, keepdims=True)
    acc_sc[...] = a * acc_sc[...] + lax.dot_general(
        p.astype(jnp.bfloat16), x_src_ref[...],
        dimension_numbers=(((1,), (0,)), ((), ())),
        preferred_element_type=jnp.float32)                       # [TM, Cp]
    m_sc[...] = m_new

    @pl.when(j == pl.num_programs(1) - 1)
    def _():
        denom = jnp.maximum(l_sc[...], jnp.float32(1e-16))
        out_ref[...] = acc_sc[...] * pl.reciprocal(denom, approx=True)
        if want_stats:
            # tiny masked store, final call only (lane-dense layout not worth it)
            stats_ref[:, 0:1] = m_sc[...]
            stats_ref[:, 1:2] = l_sc[...]


# ------------------------------ tiling helpers ------------------------------ #

def _refine_vmem_bytes(tile_m, tile_s, c_pad):
    io = 2 * (tile_m * c_pad * 2          # xn dst tile (bf16)
              + 2 * tile_s * c_pad * 2    # xn src + raw-x src tiles (bf16)
              + tile_m * tile_s * 1       # int8 mask tile
              + tile_m * c_pad * 4        # output tile
              + tile_m * 2 * 4)           # stats tile
    scratch = tile_m * c_pad * 4 + 2 * tile_m * 4
    tmp = 5 * tile_m * tile_s * 4         # s / mask_f / p temporaries
    return io + scratch + tmp


def _pick_tile_m(n_dst):
    # TM=256 feeds the 256-wide v6e/v7x MXU; v5e (128-wide MXU) loses nothing.
    tile_m = min(256, _round_up(max(n_dst, 1), MASK_SUBLANE))
    if tile_m > MASK_SUBLANE and _round_up(n_dst, tile_m) // tile_m < 2:
        # guarantee >= 2 "parallel" dst steps so both v7x TensorCores are used
        tile_m = max(MASK_SUBLANE, _round_up((n_dst + 1) // 2, MASK_SUBLANE))
    return tile_m


def _pick_tile_s(n_src, cap):
    ts_max = 1024 if cap >= (100 << 20) else 512   # bigger source tiles on 128MiB chips
    return min(ts_max, _round_up(max(n_src, 1), LANE))


# ------------------------------ kernel wrappers ----------------------------- #

def run_mlp(features_pad, w_pad, b_pad, *, tile_i):
    i_pad, dim_feat = features_pad.shape
    c_pad = w_pad.shape[1]
    grid = (i_pad // tile_i,)
    cost = pl.CostEstimate(
        flops=int(2 * i_pad * dim_feat * c_pad),
        transcendentals=0,
        bytes_accessed=int(features_pad.size * 2 + w_pad.size * 2
                           + b_pad.size * 4 + i_pad * c_pad * 4))
    return pl.pallas_call(
        mlp_kernel,
        out_shape=jax.ShapeDtypeStruct((i_pad, c_pad), jnp.float32),
        grid_spec=pltpu.PrefetchScalarGridSpec(
            num_scalar_prefetch=0,
            grid=grid,
            in_specs=[
                pl.BlockSpec((tile_i, dim_feat), lambda i: (i, 0)),
                pl.BlockSpec((dim_feat, c_pad), lambda i: (0, 0)),
                pl.BlockSpec((1, c_pad), lambda i: (0, 0)),
            ],
            out_specs=pl.BlockSpec((tile_i, c_pad), lambda i: (i, 0))),
        compiler_params=pltpu.CompilerParams(dimension_semantics=("parallel",)),
        cost_estimate=cost,
    )(features_pad, w_pad, b_pad)


def run_refine(x, mask, *, has_act, tile_m, tile_s, want_stats, vmem_budget):
    n_rows, c_pad = x.shape
    n_dst_pad, n_src = mask.shape
    assert n_src == n_rows
    assert n_dst_pad % tile_m == 0 and n_rows % tile_s == 0

    # hoisted (once per call, not per grid step): L2-normalize + bf16 casts
    xn = l2_normalize(x).astype(jnp.bfloat16)
    x_b = x.astype(jnp.bfloat16)

    grid = (n_dst_pad // tile_m, n_rows // tile_s)
    kern = functools.partial(refine_kernel, has_act=has_act, want_stats=want_stats)

    out_shape = [jax.ShapeDtypeStruct((n_dst_pad, c_pad), jnp.float32)]
    out_specs = [pl.BlockSpec((tile_m, c_pad), lambda i, j: (i, 0))]
    if want_stats:
        out_shape.append(jax.ShapeDtypeStruct((n_dst_pad, 2), jnp.float32))
        out_specs.append(pl.BlockSpec((tile_m, 2), lambda i, j: (i, 0)))

    est = _refine_vmem_bytes(tile_m, tile_s, c_pad)
    vmem_limit = int(min(max(32 << 20, 2 * est), max(vmem_budget, 32 << 20)))
    n_src_tiles = n_rows // tile_s
    n_dst_tiles = n_dst_pad // tile_m
    cost = pl.CostEstimate(
        flops=int(4 * n_dst_pad * n_rows * c_pad),                # two matmuls
        transcendentals=int(n_dst_pad * n_rows),                  # exp
        bytes_accessed=int(mask.size
                           + n_dst_tiles * n_rows * c_pad * 4     # xn + raw-x src streams
                           + n_dst_pad * c_pad * 2                # xn dst stream
                           + n_dst_pad * c_pad * 4                # output
                           + (n_dst_pad * 8 if want_stats else 0)))

    res = pl.pallas_call(
        kern,
        out_shape=tuple(out_shape),
        grid_spec=pltpu.PrefetchScalarGridSpec(
            num_scalar_prefetch=0,
            grid=grid,
            in_specs=[
                pl.BlockSpec((tile_m, c_pad), lambda i, j: (i, 0)),   # xn dst tile
                pl.BlockSpec((tile_s, c_pad), lambda i, j: (j, 0)),   # xn src tile
                pl.BlockSpec((tile_s, c_pad), lambda i, j: (j, 0)),   # raw-x src tile
                pl.BlockSpec((tile_m, tile_s), lambda i, j: (i, j)),  # int8 adjacency
            ],
            out_specs=tuple(out_specs),
            scratch_shapes=[
                pltpu.VMEM((tile_m, 1), jnp.float32),      # running max
                pltpu.VMEM((tile_m, 1), jnp.float32),      # running denom
                pltpu.VMEM((tile_m, c_pad), jnp.float32),  # running accumulator
            ]),
        compiler_params=pltpu.CompilerParams(
            dimension_semantics=("parallel", "arbitrary"),
            vmem_limit_bytes=vmem_limit),
        cost_estimate=cost,
    )(xn, xn, x_b, mask)

    if want_stats:
        return res[0], res[1]
    return res[0], None


# ------------------------------- CGCN forward ------------------------------- #

def l2_normalize(x, eps=1e-12):
    n = jnp.sqrt(jnp.sum(x * x, axis=-1, keepdims=True))
    return x / jnp.maximum(n, eps)


def edges_to_mask(edge_index, n_dst, n_src):
    # edge_index[0] = source j, edge_index[1] = target i (PyG convention)
    m = jnp.zeros((n_dst, n_src), jnp.int8)
    return m.at[edge_index[1], edge_index[0]].set(1)


def cgcn_forward(params, features, adj, adj_user, *, num_user, num_item,
                 num_routing, has_act, has_norm):
    n_nodes = num_user + num_item
    dim_feat = features.shape[1]
    dim_c = params["mlp_w"].shape[1]
    c_pad = _round_up(dim_c, LANE)

    # ---- MLP + leaky_relu on item content features (row-tiled Pallas kernel)
    tile_i = min(256, _round_up(num_item, 16))            # bf16 sublane multiple
    i_pad = _round_up(num_item, tile_i)
    feat_p = jnp.zeros((i_pad, dim_feat), jnp.bfloat16).at[:num_item].set(
        features.astype(jnp.bfloat16))
    w_p = jnp.zeros((dim_feat, c_pad), jnp.bfloat16).at[:, :dim_c].set(
        params["mlp_w"].astype(jnp.bfloat16))
    b_p = jnp.zeros((1, c_pad), jnp.float32).at[:, :dim_c].set(params["mlp_b"])
    feat = run_mlp(feat_p, w_p, b_p, tile_i=tile_i)[:num_item]          # [I, Cp]

    pref = jnp.zeros((num_user, c_pad), jnp.float32).at[:, :dim_c].set(
        params["preference"])                                           # [U, Cp]
    if has_norm:
        pref = l2_normalize(pref)
        feat = l2_normalize(feat)

    # ---- generation-aware tiling / padding (lane-dense source dimension)
    cap = _vmem_capacity()
    vmem_budget = min(int(cap * 0.70), 96 << 20)   # <=~45MiB on v7x, ~90MiB on v5e/v6e
    tile_s = _pick_tile_s(n_nodes, cap)
    tile_m_u = _pick_tile_m(num_user)
    tile_m_f = _pick_tile_m(n_nodes)
    while (_refine_vmem_bytes(max(tile_m_u, tile_m_f), tile_s, c_pad) > vmem_budget
           and tile_s > LANE):
        tile_s = max(LANE, (tile_s // 2) // LANE * LANE)

    n_dst_u = _round_up(num_user, tile_m_u)
    n_dst_f = _round_up(n_nodes, tile_m_f)
    n_rows = _round_up(max(n_nodes, n_dst_u, n_dst_f), tile_s)   # padded x row count

    mask_user = edges_to_mask(adj_user, n_dst_u, n_rows)   # users are dst only
    mask_full = edges_to_mask(adj, n_dst_f, n_rows)

    def pack_x(pref_, feat_):
        x = jnp.zeros((n_rows, c_pad), jnp.float32)
        x = x.at[:num_user].set(pref_)
        x = x.at[num_user:n_nodes].set(feat_)
        return x

    # ---- routing iterations: refine user preferences (no alpha writeback)
    # TODO(synk): fuse the num_routing iterations behind one pallas_call so
    # mask_user / feat rows are not re-streamed from HBM every iteration.
    for _ in range(num_routing):
        x_pad = pack_x(pref, feat)
        x_hat_u, _ = run_refine(x_pad, mask_user, has_act=has_act,
                                tile_m=tile_m_u, tile_s=tile_s,
                                want_stats=False, vmem_budget=vmem_budget)
        pref = pref + x_hat_u[:num_user]
        if has_norm:
            pref = l2_normalize(pref)

    # ---- final propagation over the full graph (+ per-row softmax stats)
    x_pad = pack_x(pref, feat)
    x_hat, stats = run_refine(x_pad, mask_full, has_act=has_act,
                              tile_m=tile_m_f, tile_s=tile_s,
                              want_stats=True, vmem_budget=vmem_budget)
    x = x_pad[:n_nodes]
    x_hat = x_hat[:n_nodes]
    if has_act:
        # spec applies leaky_relu to x_hat_1 in CGCN.forward (in addition to the
        # has_act leaky on the similarity scores inside the refining layer)
        x_hat = _leaky(x_hat)
    out = (x + x_hat)[:, :dim_c]

    # ---- per-edge alpha (O(E), no dense [N,N] gather); matches the in-kernel
    # softmax weights up to bf16-vs-f32 rounding of the similarity score.
    xn = l2_normalize(x)
    src_e, dst_e = adj[0], adj[1]
    s_e = jnp.sum(xn[dst_e] * xn[src_e], axis=-1)
    if has_act:
        s_e = _leaky(s_e)
    alpha = (jnp.exp(s_e - stats[dst_e, 0]) /
             jnp.maximum(stats[dst_e, 1], 1e-16)).reshape(-1, 1)
    return out, alpha


# ---------------------------------- main ------------------------------------ #

if __name__ == "__main__":
    num_user, num_item = 8, 8
    dim_feat, dim_C = 16, 32
    num_routing = 3
    has_act, has_norm = True, True
    n_nodes = num_user + num_item

    key = jax.random.PRNGKey(0)
    k_feat, k_pref, k_w, k_b = jax.random.split(key, 4)

    # item content features (the `features` tensor handed to __init__, is_word=False)
    features = jax.random.normal(k_feat, (num_item, dim_feat), dtype=jnp.float32)

    # deterministic parameter init (xavier-normal-style)
    pref_std = jnp.sqrt(2.0 / (num_user + dim_C))
    w_std = jnp.sqrt(2.0 / (dim_feat + dim_C))
    params = {
        "preference": pref_std * jax.random.normal(k_pref, (num_user, dim_C), jnp.float32),
        # stored pre-transposed relative to torch Linear: [dim_feat, dim_C]
        "mlp_w": w_std * jax.random.normal(k_w, (dim_feat, dim_C), jnp.float32),
        "mlp_b": (1.0 / jnp.sqrt(dim_feat)) *
                 jax.random.uniform(k_b, (1, dim_C), jnp.float32, -1.0, 1.0),
    }

    # deterministic bipartite edge lists (global node ids: users then items)
    src, dst = [], []
    for u in range(num_user):
        for it in (u % num_item, (u + 3) % num_item):
            i_node = num_user + it
            src += [i_node, u]     # item -> user
            dst += [u, i_node]     # user -> item
    adj = jnp.array([src, dst], dtype=jnp.int32)           # [2, 32]

    src_u = [num_user + (u % num_item) for u in range(num_user)] + \
            [num_user + ((u + 3) % num_item) for u in range(num_user)]
    dst_u = list(range(num_user)) * 2
    adj_user = jnp.array([src_u, dst_u], dtype=jnp.int32)  # [2, 16]

    out, alpha = cgcn_forward(
        params, features, adj, adj_user,
        num_user=num_user, num_item=num_item, num_routing=num_routing,
        has_act=has_act, has_norm=has_norm)

    jax.block_until_ready(out)
    jax.block_until_ready(alpha)
    assert out.shape == (n_nodes, dim_C) and alpha.shape == (adj.shape[1], 1)
    assert bool(jnp.all(jnp.isfinite(out))) and bool(jnp.all(jnp.isfinite(alpha)))
    print("KERNEL_OK")
</pallas_src>

<mosaic_0001>
module attributes {stable_mosaic.version = 11 : i64} {
  func.func @mlp_kernel(%arg0: i32, %arg1: memref<16x16xbf16, #tpu.memory_space<vmem>>, %arg2: memref<16x128xbf16, #tpu.memory_space<vmem>>, %arg3: memref<1x128xf32, #tpu.memory_space<vmem>>, %arg4: memref<16x128xf32, #tpu.memory_space<vmem>>) attributes {dimension_semantics = [#tpu.dimension_semantics<parallel>], iteration_bounds = array<i64: 1>, scalar_prefetch = 0 : i64, scratch_operands = 0 : i64, tpu.core_type = #tpu.core_type<tc>, window_params = [{transform_indices = @transform_0, window_bounds = array<i64: 16, 16>}, {pipeline_mode = #tpu.pipeline_mode<synchronous>, transform_indices = @transform_1, window_bounds = array<i64: 16, 128>}, {pipeline_mode = #tpu.pipeline_mode<synchronous>, transform_indices = @transform_2, window_bounds = array<i64: 1, 128>}, {transform_indices = @transform_3, window_bounds = array<i64: 16, 128>}]} {
    %c0 = arith.constant 0 : index
    %c0_0 = arith.constant 0 : index
    %0 = vector.load %arg1[%c0, %c0_0] : memref<16x16xbf16, #tpu.memory_space<vmem>>, vector<16x16xbf16>
    %c0_1 = arith.constant 0 : index
    %c0_2 = arith.constant 0 : index
    %1 = vector.load %arg2[%c0_1, %c0_2] : memref<16x128xbf16, #tpu.memory_space<vmem>>, vector<16x128xbf16>
    %cst = arith.constant dense<0.000000e+00> : vector<16x128xf32>
    %2 = tpu.matmul %0, %1, %cst {dimension_numbers = #tpu.dot_dimension_numbers<[1], [0], [0], [1], [0, 0, 1, 1], [], []>} : vector<16x16xbf16>, vector<16x128xbf16>, vector<16x128xf32> -> vector<16x128xf32>
    %c0_3 = arith.constant 0 : index
    %c0_4 = arith.constant 0 : index
    %3 = vector.load %arg3[%c0_3, %c0_4] : memref<1x128xf32, #tpu.memory_space<vmem>>, vector<1x128xf32>
    %4 = vector.broadcast %3 : vector<1x128xf32> to vector<16x128xf32>
    %5 = arith.addf %2, %4 : vector<16x128xf32>
    %cst_5 = arith.constant 0.000000e+00 : f32
    %6 = vector.broadcast %cst_5 : f32 to vector<16x128xf32>
    %7 = arith.cmpf oge, %5, %6 : vector<16x128xf32>
    %cst_6 = arith.constant 0.00999999977 : f32
    %8 = vector.broadcast %cst_6 : f32 to vector<16x128xf32>
    %9 = arith.mulf %8, %5 : vector<16x128xf32>
    %10 = arith.select %7, %5, %9 : vector<16x128xi1>, vector<16x128xf32>
    %c0_7 = arith.constant 0 : index
    %c0_8 = arith.constant 0 : index
    %11 = vector.load %arg4[%c0_7, %c0_8] : memref<16x128xf32, #tpu.memory_space<vmem>>, vector<16x128xf32>
    tpu.vector_store %arg4[%c0_7, %c0_8], %10 {strides = array<i32>} : memref<16x128xf32, #tpu.memory_space<vmem>>, vector<16x128xf32>,
    return
  }
  func.func @transform_0(%arg0: i32) -> (i32, i32) {
    %c0_i32 = arith.constant 0 : i32
    %c0_i32_0 = arith.constant 0 : i32
    return %arg0, %c0_i32 : i32, i32
  }
  func.func @transform_1(%arg0: i32) -> (i32, i32) {
    %c0_i32 = arith.constant 0 : i32
    %c0_i32_0 = arith.constant 0 : i32
    %c0_i32_1 = arith.constant 0 : i32
    return %c0_i32, %c0_i32_0 : i32, i32
  }
  func.func @transform_2(%arg0: i32) -> (i32, i32) {
    %c0_i32 = arith.constant 0 : i32
    %c0_i32_0 = arith.constant 0 : i32
    %c0_i32_1 = arith.constant 0 : i32
    return %c0_i32, %c0_i32_0 : i32, i32
  }
  func.func @transform_3(%arg0: i32) -> (i32, i32) {
    %c0_i32 = arith.constant 0 : i32
    %c0_i32_0 = arith.constant 0 : i32
    return %arg0, %c0_i32 : i32, i32
  }
}

</mosaic_0001>

<bundles_post_ra>
// kernel: tpu_custom_call.1
= control target key start
LH: loop header
LB: loop body
LE: loop exit
PB: predicated region body
PF: predicated region fallthrough
CT: control target
= control target key end

     0   :  { %8 = vsyncpa [#allocation3], 0  ;;  %s267_s0 = inlined_call_operand.hbm [shape: bf16[16,16], index: 0, kind: input, shape index: {}]   ;;  %s268_s1 = inlined_call_operand.hbm [shape: bf16[16,128], index: 1, kind: input, shape index: {}]   ;;  %s269_s2 = inlined_call_operand.vmem [shape: f32[1,128], index: 2, kind: input, shape index: {}]   ;;  %s270_s3 = inlined_call_operand.hbm [shape: f32[16,128], index: 3, kind: output, shape index: {}]  }
   0x1   :  { %9 = vsyncpa [#allocation6], 0 }
   0x2   :  { %10 = vsyncpa [#allocation4], 0  ;;  %s226_s12 = smov [#allocation2]  }
   0x3   :  { %s16_s13 = sshll.u32 %s226_s12, 4  ;;  %s17_s13 = int_to_ptr.vmem [resolvable:$true] %s16_s13 }
   0x4   :  { %s168_s14 = scalar_lea.vmem %s17_s13, 128  ;;  %p173_p1 = scmp.lt.s32.totalorder %s17_s13, %s17_s13 }
   0x5   :  { %p169_p0 = scmp.ne.s32.totalorder %s17_s13, %s168_s14  ;;  %p174_p2 = scmp.lt.s32.totalorder %s168_s14, %s168_s14 }
   0x7   :  { %p175_p3 = por %p174_p2, %p173_p1 }
   0x9   :  { %p176_p4 = pnand %p175_p3, %p169_p0 }
   0xb   :  { %179 = shalt.err (!%p176_p4)
}
   0xc   :  { %s227_s15 = smov 64   ;;  %s228_s16 = smov 4  }
   0xd   :  { %22 = dma.hbm_to_vmem [thread:$0]  %s267_s0, 128, %s17_s13, [#allocation3], %s227_s15, %s227_s15, %s228_s16  }
   0xe   :  { %s229_s19 = smov [#allocation5]  }
   0xf   :  { %s28_s20 = sshll.u32 %s229_s19, 4  ;;  %s29_s20 = int_to_ptr.vmem [resolvable:$true] %s28_s20 }
  0x10   :  { %s188_s21 = scalar_lea.vmem %s29_s20, 128  ;;  %p193_p6 = scmp.lt.s32.totalorder %s29_s20, %s29_s20 }
  0x11   :  { %p189_p5 = scmp.ne.s32.totalorder %s29_s20, %s188_s21  ;;  %p194_p7 = scmp.lt.s32.totalorder %s188_s21, %s188_s21 }
  0x13   :  { %p195_p8 = por %p194_p7, %p193_p6 }
  0x15   :  { %p196_p9 = pnand %p195_p8, %p189_p5 }
  0x17   :  { %199 = shalt.err (!%p196_p9)
}
  0x18   :  { %34 = dma.hbm_to_vmem [thread:$0]  %s268_s1, 128, %s29_s20, [#allocation6], %s227_s15, %s227_s15, %s228_s16  }
  0x19   :  { %220 = dma.done.wait [#allocation3], 128  }
  0x1a   :  { %221 = vsyncadd [#allocation3], 4294967168 }
  0x1b   :  { %222 = dma.done.wait [#allocation6], 128  }
  0x1c   :  { %223 = vsyncadd [#allocation6], 4294967168  ;;  %v230_v0 = vmov 0.0   ;;  %vm231_vm0 = vmmov 0   ;;  %v158_v1 = vld [vmem:[#allocation5] sm:$0xff]   ;;  %v159_v2 = vld [vmem:[#allocation2] sm:$0xff]  }
  0x1d   :  { %143 = vmatprep.subr.bf16.mxu0 %v230_v0  ;;  %145 = vmatprep.mubr.msk.bf16.mxu0 %vm231_vm0, %v230_v0  ;;  %vm66_vm1 = vcmask 130048   ;;  %v137_v3 = vld [vmem:[%s269_s2] ss:$0 sm:$0xff]  ;;  %s232_s1 = smov [#allocation7]  }
  0x1e   :  { %144 = vmatpush3.bf16.msra.mxu0 %v158_v1  ;;  %s124_s25 = sshll.u32 %s232_s1, 4  ;;  %s125_s25 = int_to_ptr.vmem [resolvable:$true] %s124_s25 }
  0x1f   :  { %s200_s26 = scalar_lea.vmem %s125_s25, 256  ;;  %p205_p11 = scmp.lt.s32.totalorder %s125_s25, %s125_s25 }
  0x20   :  { %p201_p10 = scmp.ne.s32.totalorder %s125_s25, %s200_s26  ;;  %p206_p12 = scmp.lt.s32.totalorder %s200_s26, %s200_s26 }
  0x21   :  { %146 = vmatmul.mubr.msk.bf16.vlgmr.msra.gmra.mxu0 %vm66_vm1, %v159_v2 }
  0x22   :  { %p207_p13 = por %p206_p12, %p205_p11 }
  0x24   :  { %p208_p0 = pnand %p207_p13, %p201_p10 }
  0xe1   :  { %v104_v4 = vpop.f32.mrf.mxu0 }
  0xe2   :  { %v105_v5 = vadd.f32 %v137_v3, %v104_v4 }
  0xe3   :  { %v147_v6 = vpop.f32.mrf.mxu0 }
  0xe4   :  { %vm111_vm2 = vcmp.ge.f32.partialorder %v105_v5, 0.0  ;;  %v113_v7 = vmul.f32 0.01, %v105_v5 }
  0xe5   :  { %v107_v8 = vpop.f32.mrf.mxu0 }
  0xe6   :  { %v115_v9 = vsel %vm111_vm2, %v105_v5, %v113_v7  ;;  %v108_v10 = vadd.f32 %v137_v3, %v107_v8 }
  0xe7   :  { %117 = vst [vmem:[#allocation7] sm:$0xff] %v115_v9  ;;  %v148_v11 = vpop.f32.mrf.mxu0 }
  0xe8   :  { %vm112_vm3 = vcmp.ge.f32.partialorder %v108_v10, 0.0  ;;  %v114_v12 = vmul.f32 0.01, %v108_v10 }
  0xea   :  { %v116_v13 = vsel %vm112_vm3, %v108_v10, %v114_v12 }
  0xeb   :  { %118 = vst [vmem:[#allocation7 + $0x8] sm:$0xff] %v116_v13 }
  0xec   :  { %211 = shalt.err (!%p208_p0)
}
  0xed   :  { %s233_s2 = smov 128   ;;  %s234_s27 = smov 8  }
  0xee   :  { %130 = dma.vmem_to_hbm [thread:$0]  %s125_s25, 256, %s270_s3, [#allocation4], %s233_s2, %s233_s2, %s234_s27  }
  0xef   :  { %224 = dma.done.wait [#allocation4], 256  }
  0xf0   :  { %225 = vsyncadd [#allocation4], 4294967040 }
  0xf1   :  { %134 = vsyncpa [#allocation3], 1 }
  0xf2   :  { %135 = vsyncpa [#allocation6], 1 }
  0xf3   :  { %136 = vsyncpa [#allocation4], 1 }

</bundles_post_ra>
